<compile_context>
chip_gen: v5e
topology: v5e:2x2
jax: 0.10.0
libtpu: 0.0.40
codegen_flags: <defaults>
</compile_context>

<pallas_src>
import functools
import math

import jax
import jax.numpy as jnp
from jax.experimental import pallas as pl
from jax.experimental.pallas import tpu as pltpu


# ------------------------------ fused kernel --------------------------------

def fused_speechmix_kernel(nw_ref, h_ref, cwm_ref, cbm_ref, fw_ref, fb_ref,
                           o_ref, xa_ref, xb_ref, *, n_pre):
    """Weighted-sum + Conv1d(k=2,s=2) chain + (folded) enc_to_dec_proj, one tile.

    nw_ref : SMEM (L,) f32                softmax(weights_sum), precomputed
    h_ref  : VMEM (L, MP, 2D)             hidden states, row-pair view
                                          (row t = [x[2t] ; x[2t+1]] along lanes)
    cwm_ref: VMEM (max(n_pre,1), 2D, D)   bf16, conv layers 0..downloop-2,
                                          [l] = vstack(W0_l^T, W1_l^T)
    cbm_ref: VMEM (max(n_pre,1), 1, D)    f32, their biases
    fw_ref : VMEM (2D, Ddp) bf16          last conv folded with proj:
                                          vstack(W0^T, W1^T) @ P  (Ddp lane-padded)
    fb_ref : VMEM (1, Ddp) f32            b_last @ P + proj_b
    o_ref  : VMEM (TILE_MO, Ddp) f32      output tile
    xa_ref : VMEM (MP, D) f32             ping scratch
    xb_ref : VMEM (>=MP//2, D) f32        pong scratch
    n_pre  : static, = downloop - 1       (# conv layers not folded into the proj)
    """
    num_layers = h_ref.shape[0]
    d = fw_ref.shape[0] // 2
    bf16 = jnp.bfloat16
    f32 = jnp.float32

    # (1) Weighted sum over encoder layers: scalar-broadcast FMA on the VPU with
    #     f32 accumulation (v5e has no bf16 VALU).  Result is already in the
    #     row-pair layout, so it feeds the first conv matmul directly.
    acc = nw_ref[0] * h_ref[0].astype(f32)
    for l in range(1, num_layers):
        acc = acc + nw_ref[l] * h_ref[l].astype(f32)

    if n_pre == 0:
        # down_scale == 2: the single conv layer is folded into the projection.
        o_ref[...] = (jnp.dot(acc.astype(bf16), fw_ref[...],
                              preferred_element_type=f32) + fb_ref[...])
        return

    # (2) First Conv1d(k=2,s=2): one K=2D matmul on the pair view (no strided
    #     loads, MXU fully fed), bias add, park result in ping scratch.
    m = h_ref.shape[1]                          # rows after layer 0 == pair rows
    y = (jnp.dot(acc.astype(bf16), cwm_ref[0], preferred_element_type=f32)
         + cbm_ref[0])
    bufs = (xa_ref, xb_ref)
    src = 0
    bufs[src][0:m, :] = y

    # (3) Middle Conv1d layers: even/odd rows -> two matmuls, ping-pong scratch
    #     (no in-place compaction => no store->load hazard between layers).
    for layer in range(1, n_pre):
        mo = m // 2
        xe = bufs[src][pl.ds(0, mo, stride=2), :].astype(bf16)
        xo = bufs[src][pl.ds(1, mo, stride=2), :].astype(bf16)
        y = (jnp.dot(xe, cwm_ref[layer, 0:d, :], preferred_element_type=f32)
             + jnp.dot(xo, cwm_ref[layer, d:2 * d, :], preferred_element_type=f32)
             + cbm_ref[layer])
        src = 1 - src
        bufs[src][0:mo, :] = y
        m = mo

    # (4) Last Conv1d folded with enc_to_dec_proj: emits (TILE_MO, Ddp) directly.
    mo = m // 2
    xe = bufs[src][pl.ds(0, mo, stride=2), :].astype(bf16)
    xo = bufs[src][pl.ds(1, mo, stride=2), :].astype(bf16)
    o_ref[...] = (jnp.dot(xe, fw_ref[0:d, :], preferred_element_type=f32)
                  + jnp.dot(xo, fw_ref[d:2 * d, :], preferred_element_type=f32)
                  + fb_ref[...])


# ------------------------------- helpers -------------------------------------

def _round_up(x, m):
    return ((x + m - 1) // m) * m


def _vmem_capacity_bytes(default_bytes=64 * 1024 * 1024):
    """VMEM capacity of the local TPU (falls back to the smallest, v7x's 64 MiB)."""
    try:
        cap = int(getattr(pltpu.get_tpu_info(), "vmem_capacity_bytes", 0))
        if cap > 0:
            return cap
    except Exception:
        pass
    return default_bytes


def _choose_tile_mo(m_out, num_layers, d, d_out_p, down_scale, n_pre,
                    h_itemsize, vmem_budget_bytes, resident_weights=True):
    """Largest output-row tile (multiple of 8, dividing m_out) fitting the budget,
    preferring an even grid count >= 4 so v7x's two TensorCores stay balanced."""
    wb = 1 if resident_weights else 2
    weight_bytes = wb * (max(n_pre, 1) * 2 * d * d * 2        # cwm  (bf16)
                         + max(n_pre, 1) * d * 4              # cbm  (f32)
                         + 2 * d * d_out_p * 2                # folded proj W (bf16)
                         + d_out_p * 4)                       # folded proj b (f32)
    budget = max(vmem_budget_bytes - weight_bytes, 2 * 1024 * 1024)
    per_row = (2 * num_layers * down_scale * d * h_itemsize   # hidden tile, 2 buffers
               + 2 * d_out_p * 4                              # output tile, 2 buffers
               + (down_scale // 2 + max(down_scale // 4, 1)) * d * 4  # ping-pong scratch
               + 3 * down_scale * d * 4)                      # in-flight f32 temporaries
    cap = int(min(max(budget // per_row, 8), m_out))
    if m_out % 8 != 0:
        # Degenerate shapes: single full block (legal; toy sizes only).
        return m_out
    best = None
    for tile in range(cap - cap % 8, 7, -8):
        if m_out % tile:
            continue
        n_tiles = m_out // tile
        if best is None:
            best = tile
        if n_tiles % 2 == 0 and n_tiles >= 4:    # keep both v7x TensorCores busy
            return tile
    return best if best is not None else 8


# ------------------------------- wrapper --------------------------------------

def speechmix_eed_forward(hidden_states, params, *, tile_mo=None):
    """Pallas implementation of the SpeechMixEED-specific forward path
    (weighted_sum=True branch): weighted layer sum -> Conv1d(k=2,s=2) length
    adapters -> enc_to_dec_proj.

    hidden_states: (L, B, T, D_enc) stacked speech-encoder hidden states
                   (stand-in for encoder_outputs['hidden_states']); bf16
                   recommended -- passed to the kernel untouched (no pad/astype).
    Returns inputs_embeds: (B, T // down_scale, D_dec) float32.
    """
    L, B, T, D = hidden_states.shape
    downloop = len(params["length_adapters"])
    # TODO(synk): down_scale == 1 (Identity length adapter) and weighted_sum=False
    #             paths are not implemented in the fused kernel.
    assert downloop >= 1, "down_scale must be >= 2 for this kernel"
    down_scale = 2 ** downloop
    n_pre = downloop - 1                       # conv layers not folded into the proj
    D_dec = params["proj_w_t"].shape[1]

    # Conv1d(k=2,s=2) drops trailing steps at every layer; the composition equals
    # an upfront truncation of T to a multiple of down_scale.
    T_in = (T // down_scale) * down_scale
    T_out = T_in // down_scale
    M_in, M_out = B * T_in, B * T_out

    f32, bf16 = jnp.float32, jnp.bfloat16
    Ddp = _round_up(D_dec, 128)                # lane-dense OUTPUT (weights padded,
                                               # activations never are)

    # ---- one-time parameter prep (tiny; outside the kernel) ----
    nw = jax.nn.softmax(params["weights_sum"].astype(f32))               # (L,)

    adapters = params["length_adapters"]
    if n_pre > 0:
        cwm = jnp.stack([jnp.concatenate([w0, w1], axis=0)                # (2D, D)
                         for (w0, w1, _) in adapters[:n_pre]]).astype(bf16)
        cbm = jnp.stack([b for (_, _, b) in adapters[:n_pre]]).astype(f32)[:, None, :]
    else:                                      # unused dummies (downloop == 1)
        cwm = jnp.zeros((1, 2 * D, D), bf16)
        cbm = jnp.zeros((1, 1, D), f32)

    # Fold the last conv layer into enc_to_dec_proj (f32 fold, then bf16 weights).
    w0l, w1l, bl = adapters[-1]
    p_w = params["proj_w_t"].astype(f32)
    p_b = params["proj_b"].astype(f32)
    fw = jnp.concatenate([w0l, w1l], axis=0).astype(f32) @ p_w            # (2D, D_dec)
    fb = bl.astype(f32) @ p_w + p_b                                       # (D_dec,)
    fw = jnp.pad(fw, ((0, 0), (0, Ddp - D_dec))).astype(bf16)
    fb = jnp.pad(fb, (0, Ddp - D_dec))[None, :]                           # (1, Ddp)

    # ---- hidden states: free row-pair view, native dtype, no padding ----
    hs = hidden_states if T_in == T else hidden_states[:, :, :T_in, :]
    hs_pair = hs.reshape(L, M_in // 2, 2 * D)       # row t = [x[2t] ; x[2t+1]]

    # ---- tiling / VMEM budgeting (device-derived) ----
    vmem_cap = _vmem_capacity_bytes()
    vmem_limit = int(min(vmem_cap * 0.80, vmem_cap - (4 << 20)))
    if tile_mo is None:
        tile_mo = _choose_tile_mo(M_out, L, D, Ddp, down_scale, n_pre,
                                  hidden_states.dtype.itemsize,
                                  int(vmem_limit * 0.9))
    assert M_out % tile_mo == 0, (M_out, tile_mo)
    tile_mi = tile_mo * down_scale
    mpairs = tile_mi // 2
    grid = (M_out // tile_mo,)

    kernel = functools.partial(fused_speechmix_kernel, n_pre=n_pre)

    def run(resident_weights):
        def weight_spec(shape, imap):
            # Grid-invariant operands: ask for a single VMEM buffer so v7x does
            # not burn half its 64 MiB double-buffering weights that never change.
            if resident_weights:
                return pl.BlockSpec(shape, imap, pipeline_mode=pl.Buffered(1))
            return pl.BlockSpec(shape, imap)

        fused = pl.pallas_call(
            kernel,
            out_shape=jax.ShapeDtypeStruct((M_out, Ddp), f32),
            grid_spec=pltpu.PrefetchScalarGridSpec(
                num_scalar_prefetch=0,
                grid=grid,
                in_specs=[
                    pl.BlockSpec(memory_space=pltpu.MemorySpace.SMEM),        # nw
                    pl.BlockSpec((L, mpairs, 2 * D), lambda i: (0, i, 0)),    # hidden
                    weight_spec((max(n_pre, 1), 2 * D, D), lambda i: (0, 0, 0)),
                    weight_spec((max(n_pre, 1), 1, D), lambda i: (0, 0, 0)),
                    weight_spec((2 * D, Ddp), lambda i: (0, 0)),
                    weight_spec((1, Ddp), lambda i: (0, 0)),
                ],
                out_specs=pl.BlockSpec((tile_mo, Ddp), lambda i: (i, 0)),
                scratch_shapes=[
                    pltpu.VMEM((max(mpairs, 8), D), f32),           # ping scratch
                    pltpu.VMEM((max(mpairs // 2, 8), D), f32),      # pong scratch
                ],
            ),
            compiler_params=pltpu.CompilerParams(
                dimension_semantics=("parallel",),    # shard tiles across v7x TCs
                vmem_limit_bytes=vmem_limit,
            ),
        )
        return fused(nw, hs_pair, cwm, cbm, fw, fb)

    try:
        out2d = run(resident_weights=True)      # single-buffer grid-invariant weights
    except Exception:
        out2d = run(resident_weights=False)     # runtimes without pipeline_mode support

    inputs_embeds = out2d.reshape(B, T_out, Ddp)
    if Ddp != D_dec:
        inputs_embeds = inputs_embeds[..., :D_dec]
    return inputs_embeds


# --------------------------- pure-JAX reference ------------------------------

def reference_forward(hidden_states, params):
    """Pure-JAX f32 reference for the weighted_sum=True SpeechMixEED hot path."""
    nw = jax.nn.softmax(params["weights_sum"].astype(jnp.float32))
    x = jnp.einsum("l,lbtd->btd", nw, hidden_states.astype(jnp.float32))
    for (w0_t, w1_t, b) in params["length_adapters"]:
        t = x.shape[1] - (x.shape[1] % 2)            # Conv1d(k=2,s=2) trailing drop
        x = x[:, 0:t:2, :] @ w0_t + x[:, 1:t:2, :] @ w1_t + b
    return x @ params["proj_w_t"] + params["proj_b"]


# ----------------------------------- main -------------------------------------

if __name__ == "__main__":
    # Small synthetic config consistent with SpeechMixEED.forward
    L = 4            # num_speech_encoder_layers
    B = 2            # batch
    T = 128          # speech-encoder output sequence length
    D_ENC = 32       # encoder_model.model.final_proj.in_features
    D_DEC = 48       # decoder_model.config.hidden_size
    DOWN_SCALE = 8
    DOWNLOOP = int(math.log(DOWN_SCALE, 2))   # 3 Conv1d layers; T: 128 -> 16

    key = jax.random.PRNGKey(0)
    keys = jax.random.split(key, 3 + 2 * DOWNLOOP)

    # Stand-in for encoder_outputs['hidden_states'] (external speech model);
    # kept bf16 in HBM, as a bf16 speech encoder would emit (halves HBM traffic).
    hidden_states = jax.random.normal(
        keys[0], (L, B, T, D_ENC), dtype=jnp.float32).astype(jnp.bfloat16)

    # Parameters (weights_sum starts at zeros, as in __init__).
    length_adapters = []
    for i in range(DOWNLOOP):
        fan_in = D_ENC * 2
        scale = 1.0 / math.sqrt(fan_in)
        w0_t = scale * jax.random.normal(keys[1 + 2 * i], (D_ENC, D_ENC), jnp.float32)
        w1_t = scale * jax.random.normal(keys[2 + 2 * i], (D_ENC, D_ENC), jnp.float32)
        b = jnp.full((D_ENC,), 0.01 * (i + 1), dtype=jnp.float32)
        length_adapters.append((w0_t, w1_t, b))

    proj_scale = 1.0 / math.sqrt(D_ENC)
    params = {
        "weights_sum": jnp.zeros((L,), dtype=jnp.float32),
        "length_adapters": length_adapters,
        "proj_w_t": proj_scale
        * jax.random.normal(keys[1 + 2 * DOWNLOOP], (D_ENC, D_DEC), jnp.float32),
        "proj_b": 0.02 * jnp.ones((D_DEC,), dtype=jnp.float32),
    }

    # Tile chooser picks tile_mo=8 here -> grid of 4 parallel steps.
    out = speechmix_eed_forward(hidden_states, params)
    out = jax.block_until_ready(out)

    expected_shape = (B, T // DOWN_SCALE, D_DEC)
    assert out.shape == expected_shape, (out.shape, expected_shape)

    ref = reference_forward(hidden_states, params)
    max_err = float(jnp.max(jnp.abs(out - ref)))
    rel_err = float(jnp.linalg.norm(out - ref) / (jnp.linalg.norm(ref) + 1e-12))
    # bf16 MXU operands + folded last-layer/proj weights => loosened tolerance.
    assert max_err < 0.1 and rel_err < 0.02, (max_err, rel_err)

    print("KERNEL_OK")
</pallas_src>

<mosaic_0001>
module attributes {stable_mosaic.version = 11 : i64} {
  func.func @fused_speechmix_kernel(%arg0: i32, %arg1: memref<4xf32, #tpu.memory_space<smem>>, %arg2: memref<4x32x64xbf16, #tpu.memory_space<vmem>>, %arg3: memref<2x64x32xbf16, #tpu.memory_space<vmem>>, %arg4: memref<2x1x32xf32, #tpu.memory_space<vmem>>, %arg5: memref<64x128xbf16, #tpu.memory_space<vmem>>, %arg6: memref<1x128xf32, #tpu.memory_space<vmem>>, %arg7: memref<8x128xf32, #tpu.memory_space<vmem>>, %arg8: memref<32x32xf32, #tpu.memory_space<vmem>>, %arg9: memref<16x32xf32, #tpu.memory_space<vmem>>) attributes {dimension_semantics = [#tpu.dimension_semantics<parallel>], iteration_bounds = array<i64: 4>, scalar_prefetch = 0 : i64, scratch_operands = 2 : i64, tpu.core_type = #tpu.core_type<tc>, window_params = [{transform_indices = @transform_0, window_bounds = array<i64: 4>}, {transform_indices = @transform_1, window_bounds = array<i64: 4, 32, 64>}, {pipeline_mode = #tpu.pipeline_mode<synchronous>, transform_indices = @transform_2, window_bounds = array<i64: 2, 64, 32>}, {pipeline_mode = #tpu.pipeline_mode<synchronous>, transform_indices = @transform_3, window_bounds = array<i64: 2, 1, 32>}, {pipeline_mode = #tpu.pipeline_mode<synchronous>, transform_indices = @transform_4, window_bounds = array<i64: 64, 128>}, {pipeline_mode = #tpu.pipeline_mode<synchronous>, transform_indices = @transform_5, window_bounds = array<i64: 1, 128>}, {transform_indices = @transform_6, window_bounds = array<i64: 8, 128>}]} {
    %c0 = arith.constant 0 : index
    %0 = memref.load %arg1[%c0] : memref<4xf32, #tpu.memory_space<smem>>
    %c0_0 = arith.constant 0 : index
    %c0_1 = arith.constant 0 : index
    %c0_2 = arith.constant 0 : index
    %1 = vector.load %arg2[%c0_0, %c0_1, %c0_2] : memref<4x32x64xbf16, #tpu.memory_space<vmem>>, vector<1x32x64xbf16>
    %2 = vector.shape_cast %1 : vector<1x32x64xbf16> to vector<32x64xbf16>
    %3 = arith.extf %2 : vector<32x64xbf16> to vector<32x64xf32>
    %4 = vector.broadcast %0 : f32 to vector<32x64xf32>
    %5 = arith.mulf %4, %3 : vector<32x64xf32>
    %c1 = arith.constant 1 : index
    %6 = memref.load %arg1[%c1] : memref<4xf32, #tpu.memory_space<smem>>
    %c1_3 = arith.constant 1 : index
    %c0_4 = arith.constant 0 : index
    %c0_5 = arith.constant 0 : index
    %7 = vector.load %arg2[%c1_3, %c0_4, %c0_5] : memref<4x32x64xbf16, #tpu.memory_space<vmem>>, vector<1x32x64xbf16>
    %8 = vector.shape_cast %7 : vector<1x32x64xbf16> to vector<32x64xbf16>
    %9 = arith.extf %8 : vector<32x64xbf16> to vector<32x64xf32>
    %10 = vector.broadcast %6 : f32 to vector<32x64xf32>
    %11 = arith.mulf %10, %9 : vector<32x64xf32>
    %12 = arith.addf %5, %11 : vector<32x64xf32>
    %c2 = arith.constant 2 : index
    %13 = memref.load %arg1[%c2] : memref<4xf32, #tpu.memory_space<smem>>
    %c2_6 = arith.constant 2 : index
    %c0_7 = arith.constant 0 : index
    %c0_8 = arith.constant 0 : index
    %14 = vector.load %arg2[%c2_6, %c0_7, %c0_8] : memref<4x32x64xbf16, #tpu.memory_space<vmem>>, vector<1x32x64xbf16>
    %15 = vector.shape_cast %14 : vector<1x32x64xbf16> to vector<32x64xbf16>
    %16 = arith.extf %15 : vector<32x64xbf16> to vector<32x64xf32>
    %17 = vector.broadcast %13 : f32 to vector<32x64xf32>
    %18 = arith.mulf %17, %16 : vector<32x64xf32>
    %19 = arith.addf %12, %18 : vector<32x64xf32>
    %c3 = arith.constant 3 : index
    %20 = memref.load %arg1[%c3] : memref<4xf32, #tpu.memory_space<smem>>
    %c3_9 = arith.constant 3 : index
    %c0_10 = arith.constant 0 : index
    %c0_11 = arith.constant 0 : index
    %21 = vector.load %arg2[%c3_9, %c0_10, %c0_11] : memref<4x32x64xbf16, #tpu.memory_space<vmem>>, vector<1x32x64xbf16>
    %22 = vector.shape_cast %21 : vector<1x32x64xbf16> to vector<32x64xbf16>
    %23 = arith.extf %22 : vector<32x64xbf16> to vector<32x64xf32>
    %24 = vector.broadcast %20 : f32 to vector<32x64xf32>
    %25 = arith.mulf %24, %23 : vector<32x64xf32>
    %26 = arith.addf %19, %25 : vector<32x64xf32>
    %27 = arith.truncf %26 : vector<32x64xf32> to vector<32x64xbf16>
    %c0_12 = arith.constant 0 : index
    %c0_13 = arith.constant 0 : index
    %c0_14 = arith.constant 0 : index
    %28 = vector.load %arg3[%c0_12, %c0_13, %c0_14] : memref<2x64x32xbf16, #tpu.memory_space<vmem>>, vector<1x64x32xbf16>
    %29 = vector.shape_cast %28 : vector<1x64x32xbf16> to vector<64x32xbf16>
    %cst = arith.constant dense<0.000000e+00> : vector<32x32xf32>
    %30 = tpu.matmul %27, %29, %cst {dimension_numbers = #tpu.dot_dimension_numbers<[1], [0], [0], [1], [0, 0, 1, 1], [], []>} : vector<32x64xbf16>, vector<64x32xbf16>, vector<32x32xf32> -> vector<32x32xf32>
    %c0_15 = arith.constant 0 : index
    %c0_16 = arith.constant 0 : index
    %c0_17 = arith.constant 0 : index
    %31 = vector.load %arg4[%c0_15, %c0_16, %c0_17] : memref<2x1x32xf32, #tpu.memory_space<vmem>>, vector<1x1x32xf32>
    %32 = vector.shape_cast %31 : vector<1x1x32xf32> to vector<1x32xf32>
    %33 = vector.broadcast %32 : vector<1x32xf32> to vector<32x32xf32>
    %34 = arith.addf %30, %33 : vector<32x32xf32>
    %c0_18 = arith.constant 0 : index
    %c0_19 = arith.constant 0 : index
    %35 = vector.load %arg8[%c0_18, %c0_19] : memref<32x32xf32, #tpu.memory_space<vmem>>, vector<32x32xf32>
    tpu.vector_store %arg8[%c0_18, %c0_19], %34 {strides = array<i32>} : memref<32x32xf32, #tpu.memory_space<vmem>>, vector<32x32xf32>,
    %c0_20 = arith.constant 0 : index
    %c0_21 = arith.constant 0 : index
    %36 = tpu.strided_load %arg8[%c0_20, %c0_21] {strides = array<i32: 2, 1>} : memref<32x32xf32, #tpu.memory_space<vmem>>, vector<16x32xf32>
    %37 = arith.truncf %36 : vector<16x32xf32> to vector<16x32xbf16>
    %c1_22 = arith.constant 1 : index
    %c0_23 = arith.constant 0 : index
    %38 = tpu.strided_load %arg8[%c1_22, %c0_23] {strides = array<i32: 2, 1>} : memref<32x32xf32, #tpu.memory_space<vmem>>, vector<16x32xf32>
    %39 = arith.truncf %38 : vector<16x32xf32> to vector<16x32xbf16>
    %c1_24 = arith.constant 1 : index
    %c0_25 = arith.constant 0 : index
    %c0_26 = arith.constant 0 : index
    %40 = vector.load %arg3[%c1_24, %c0_25, %c0_26] : memref<2x64x32xbf16, #tpu.memory_space<vmem>>, vector<1x32x32xbf16>
    %41 = vector.shape_cast %40 : vector<1x32x32xbf16> to vector<32x32xbf16>
    %cst_27 = arith.constant dense<0.000000e+00> : vector<16x32xf32>
    %42 = tpu.matmul %37, %41, %cst_27 {dimension_numbers = #tpu.dot_dimension_numbers<[1], [0], [0], [1], [0, 0, 1, 1], [], []>} : vector<16x32xbf16>, vector<32x32xbf16>, vector<16x32xf32> -> vector<16x32xf32>
    %c1_28 = arith.constant 1 : index
    %c32 = arith.constant 32 : index
    %c0_29 = arith.constant 0 : index
    %43 = vector.load %arg3[%c1_28, %c32, %c0_29] : memref<2x64x32xbf16, #tpu.memory_space<vmem>>, vector<1x32x32xbf16>
    %44 = vector.shape_cast %43 : vector<1x32x32xbf16> to vector<32x32xbf16>
    %cst_30 = arith.constant dense<0.000000e+00> : vector<16x32xf32>
    %45 = tpu.matmul %39, %44, %cst_30 {dimension_numbers = #tpu.dot_dimension_numbers<[1], [0], [0], [1], [0, 0, 1, 1], [], []>} : vector<16x32xbf16>, vector<32x32xbf16>, vector<16x32xf32> -> vector<16x32xf32>
    %46 = arith.addf %42, %45 : vector<16x32xf32>
    %c1_31 = arith.constant 1 : index
    %c0_32 = arith.constant 0 : index
    %c0_33 = arith.constant 0 : index
    %47 = vector.load %arg4[%c1_31, %c0_32, %c0_33] : memref<2x1x32xf32, #tpu.memory_space<vmem>>, vector<1x1x32xf32>
    %48 = vector.shape_cast %47 : vector<1x1x32xf32> to vector<1x32xf32>
    %49 = vector.broadcast %48 : vector<1x32xf32> to vector<16x32xf32>
    %50 = arith.addf %46, %49 : vector<16x32xf32>
    %c0_34 = arith.constant 0 : index
    %c0_35 = arith.constant 0 : index
    %51 = vector.load %arg9[%c0_34, %c0_35] : memref<16x32xf32, #tpu.memory_space<vmem>>, vector<16x32xf32>
    tpu.vector_store %arg9[%c0_34, %c0_35], %50 {strides = array<i32>} : memref<16x32xf32, #tpu.memory_space<vmem>>, vector<16x32xf32>,
    %c0_36 = arith.constant 0 : index
    %c0_37 = arith.constant 0 : index
    %52 = tpu.strided_load %arg9[%c0_36, %c0_37] {strides = array<i32: 2, 1>} : memref<16x32xf32, #tpu.memory_space<vmem>>, vector<8x32xf32>
    %53 = arith.truncf %52 : vector<8x32xf32> to vector<8x32xbf16>
    %c1_38 = arith.constant 1 : index
    %c0_39 = arith.constant 0 : index
    %54 = tpu.strided_load %arg9[%c1_38, %c0_39] {strides = array<i32: 2, 1>} : memref<16x32xf32, #tpu.memory_space<vmem>>, vector<8x32xf32>
    %55 = arith.truncf %54 : vector<8x32xf32> to vector<8x32xbf16>
    %c0_40 = arith.constant 0 : index
    %c0_41 = arith.constant 0 : index
    %56 = vector.load %arg5[%c0_40, %c0_41] : memref<64x128xbf16, #tpu.memory_space<vmem>>, vector<32x128xbf16>
    %cst_42 = arith.constant dense<0.000000e+00> : vector<8x128xf32>
    %57 = tpu.matmul %53, %56, %cst_42 {dimension_numbers = #tpu.dot_dimension_numbers<[1], [0], [0], [1], [0, 0, 1, 1], [], []>} : vector<8x32xbf16>, vector<32x128xbf16>, vector<8x128xf32> -> vector<8x128xf32>
    %c32_43 = arith.constant 32 : index
    %c0_44 = arith.constant 0 : index
    %58 = vector.load %arg5[%c32_43, %c0_44] : memref<64x128xbf16, #tpu.memory_space<vmem>>, vector<32x128xbf16>
    %cst_45 = arith.constant dense<0.000000e+00> : vector<8x128xf32>
    %59 = tpu.matmul %55, %58, %cst_45 {dimension_numbers = #tpu.dot_dimension_numbers<[1], [0], [0], [1], [0, 0, 1, 1], [], []>} : vector<8x32xbf16>, vector<32x128xbf16>, vector<8x128xf32> -> vector<8x128xf32>
    %60 = arith.addf %57, %59 : vector<8x128xf32>
    %c0_46 = arith.constant 0 : index
    %c0_47 = arith.constant 0 : index
    %61 = vector.load %arg6[%c0_46, %c0_47] : memref<1x128xf32, #tpu.memory_space<vmem>>, vector<1x128xf32>
    %62 = vector.broadcast %61 : vector<1x128xf32> to vector<8x128xf32>
    %63 = arith.addf %60, %62 : vector<8x128xf32>
    %c0_48 = arith.constant 0 : index
    %c0_49 = arith.constant 0 : index
    %64 = vector.load %arg7[%c0_48, %c0_49] : memref<8x128xf32, #tpu.memory_space<vmem>>, vector<8x128xf32>
    tpu.vector_store %arg7[%c0_48, %c0_49], %63 {strides = array<i32>} : memref<8x128xf32, #tpu.memory_space<vmem>>, vector<8x128xf32>,
    return
  }
  func.func @transform_0(%arg0: i32) -> i32 {
    %c0_i32 = arith.constant 0 : i32
    %c0_i32_0 = arith.constant 0 : i32
    return %c0_i32 : i32
  }
  func.func @transform_1(%arg0: i32) -> (i32, i32, i32) {
    %c0_i32 = arith.constant 0 : i32
    %c0_i32_0 = arith.constant 0 : i32
    %c0_i32_1 = arith.constant 0 : i32
    return %c0_i32, %arg0, %c0_i32_0 : i32, i32, i32
  }
  func.func @transform_2(%arg0: i32) -> (i32, i32, i32) {
    %c0_i32 = arith.constant 0 : i32
    %c0_i32_0 = arith.constant 0 : i32
    %c0_i32_1 = arith.constant 0 : i32
    %c0_i32_2 = arith.constant 0 : i32
    return %c0_i32, %c0_i32_0, %c0_i32_1 : i32, i32, i32
  }
  func.func @transform_3(%arg0: i32) -> (i32, i32, i32) {
    %c0_i32 = arith.constant 0 : i32
    %c0_i32_0 = arith.constant 0 : i32
    %c0_i32_1 = arith.constant 0 : i32
    %c0_i32_2 = arith.constant 0 : i32
    return %c0_i32, %c0_i32_0, %c0_i32_1 : i32, i32, i32
  }
  func.func @transform_4(%arg0: i32) -> (i32, i32) {
    %c0_i32 = arith.constant 0 : i32
    %c0_i32_0 = arith.constant 0 : i32
    %c0_i32_1 = arith.constant 0 : i32
    return %c0_i32, %c0_i32_0 : i32, i32
  }
  func.func @transform_5(%arg0: i32) -> (i32, i32) {
    %c0_i32 = arith.constant 0 : i32
    %c0_i32_0 = arith.constant 0 : i32
    %c0_i32_1 = arith.constant 0 : i32
    return %c0_i32, %c0_i32_0 : i32, i32
  }
  func.func @transform_6(%arg0: i32) -> (i32, i32) {
    %c0_i32 = arith.constant 0 : i32
    %c0_i32_0 = arith.constant 0 : i32
    return %arg0, %c0_i32 : i32, i32
  }
}

module attributes {stable_mosaic.version = 11 : i64} {
  func.func @fused_speechmix_kernel(%arg0: i32, %arg1: memref<4xf32, #tpu.memory_space<smem>>, %arg2: memref<4x32x64xbf16, #tpu.memory_space<vmem>>, %arg3: memref<2x64x32xbf16, #tpu.memory_space<vmem>>, %arg4: memref<2x1x32xf32, #tpu.memory_space<vmem>>, %arg5: memref<64x128xbf16, #tpu.memory_space<vmem>>, %arg6: memref<1x128xf32, #tpu.memory_space<vmem>>, %arg7: memref<8x128xf32, #tpu.memory_space<vmem>>, %arg8: memref<32x32xf32, #tpu.memory_space<vmem>>, %arg9: memref<16x32xf32, #tpu.memory_space<vmem>>) attributes {dimension_semantics = [#tpu.dimension_semantics<parallel>], iteration_bounds = array<i64: 4>, scalar_prefetch = 0 : i64, scratch_operands = 2 : i64, tpu.core_type = #tpu.core_type<tc>, window_params = [{transform_indices = @transform_0, window_bounds = array<i64: 4>}, {transform_indices = @transform_1, window_bounds = array<i64: 4, 32, 64>}, {pipeline_mode = #tpu.pipeline_mode<synchronous>, transform_indices = @transform_2, window_bounds = array<i64: 2, 64, 32>}, {pipeline_mode = #tpu.pipeline_mode<synchronous>, transform_indices = @transform_3, window_bounds = array<i64: 2, 1, 32>}, {pipeline_mode = #tpu.pipeline_mode<synchronous>, transform_indices = @transform_4, window_bounds = array<i64: 64, 128>}, {pipeline_mode = #tpu.pipeline_mode<synchronous>, transform_indices = @transform_5, window_bounds = array<i64: 1, 128>}, {transform_indices = @transform_6, window_bounds = array<i64: 8, 128>}]} {
    %c0 = arith.constant 0 : index
    %0 = memref.load %arg1[%c0] : memref<4xf32, #tpu.memory_space<smem>>
    %c0_0 = arith.constant 0 : index
    %c0_1 = arith.constant 0 : index
    %c0_2 = arith.constant 0 : index
    %1 = vector.load %arg2[%c0_0, %c0_1, %c0_2] : memref<4x32x64xbf16, #tpu.memory_space<vmem>>, vector<1x32x64xbf16>
    %2 = vector.shape_cast %1 : vector<1x32x64xbf16> to vector<32x64xbf16>
    %3 = arith.extf %2 : vector<32x64xbf16> to vector<32x64xf32>
    %4 = vector.broadcast %0 : f32 to vector<32x64xf32>
    %5 = arith.mulf %4, %3 : vector<32x64xf32>
    %c1 = arith.constant 1 : index
    %6 = memref.load %arg1[%c1] : memref<4xf32, #tpu.memory_space<smem>>
    %c1_3 = arith.constant 1 : index
    %c0_4 = arith.constant 0 : index
    %c0_5 = arith.constant 0 : index
    %7 = vector.load %arg2[%c1_3, %c0_4, %c0_5] : memref<4x32x64xbf16, #tpu.memory_space<vmem>>, vector<1x32x64xbf16>
    %8 = vector.shape_cast %7 : vector<1x32x64xbf16> to vector<32x64xbf16>
    %9 = arith.extf %8 : vector<32x64xbf16> to vector<32x64xf32>
    %10 = vector.broadcast %6 : f32 to vector<32x64xf32>
    %11 = arith.mulf %10, %9 : vector<32x64xf32>
    %12 = arith.addf %5, %11 : vector<32x64xf32>
    %c2 = arith.constant 2 : index
    %13 = memref.load %arg1[%c2] : memref<4xf32, #tpu.memory_space<smem>>
    %c2_6 = arith.constant 2 : index
    %c0_7 = arith.constant 0 : index
    %c0_8 = arith.constant 0 : index
    %14 = vector.load %arg2[%c2_6, %c0_7, %c0_8] : memref<4x32x64xbf16, #tpu.memory_space<vmem>>, vector<1x32x64xbf16>
    %15 = vector.shape_cast %14 : vector<1x32x64xbf16> to vector<32x64xbf16>
    %16 = arith.extf %15 : vector<32x64xbf16> to vector<32x64xf32>
    %17 = vector.broadcast %13 : f32 to vector<32x64xf32>
    %18 = arith.mulf %17, %16 : vector<32x64xf32>
    %19 = arith.addf %12, %18 : vector<32x64xf32>
    %c3 = arith.constant 3 : index
    %20 = memref.load %arg1[%c3] : memref<4xf32, #tpu.memory_space<smem>>
    %c3_9 = arith.constant 3 : index
    %c0_10 = arith.constant 0 : index
    %c0_11 = arith.constant 0 : index
    %21 = vector.load %arg2[%c3_9, %c0_10, %c0_11] : memref<4x32x64xbf16, #tpu.memory_space<vmem>>, vector<1x32x64xbf16>
    %22 = vector.shape_cast %21 : vector<1x32x64xbf16> to vector<32x64xbf16>
    %23 = arith.extf %22 : vector<32x64xbf16> to vector<32x64xf32>
    %24 = vector.broadcast %20 : f32 to vector<32x64xf32>
    %25 = arith.mulf %24, %23 : vector<32x64xf32>
    %26 = arith.addf %19, %25 : vector<32x64xf32>
    %27 = arith.truncf %26 : vector<32x64xf32> to vector<32x64xbf16>
    %c0_12 = arith.constant 0 : index
    %c0_13 = arith.constant 0 : index
    %c0_14 = arith.constant 0 : index
    %28 = vector.load %arg3[%c0_12, %c0_13, %c0_14] : memref<2x64x32xbf16, #tpu.memory_space<vmem>>, vector<1x64x32xbf16>
    %29 = vector.shape_cast %28 : vector<1x64x32xbf16> to vector<64x32xbf16>
    %cst = arith.constant dense<0.000000e+00> : vector<32x32xf32>
    %30 = tpu.matmul %27, %29, %cst {dimension_numbers = #tpu.dot_dimension_numbers<[1], [0], [0], [1], [0, 0, 1, 1], [], []>} : vector<32x64xbf16>, vector<64x32xbf16>, vector<32x32xf32> -> vector<32x32xf32>
    %c0_15 = arith.constant 0 : index
    %c0_16 = arith.constant 0 : index
    %c0_17 = arith.constant 0 : index
    %31 = vector.load %arg4[%c0_15, %c0_16, %c0_17] : memref<2x1x32xf32, #tpu.memory_space<vmem>>, vector<1x1x32xf32>
    %32 = vector.shape_cast %31 : vector<1x1x32xf32> to vector<1x32xf32>
    %33 = vector.broadcast %32 : vector<1x32xf32> to vector<32x32xf32>
    %34 = arith.addf %30, %33 : vector<32x32xf32>
    %c0_18 = arith.constant 0 : index
    %c0_19 = arith.constant 0 : index
    %35 = vector.load %arg8[%c0_18, %c0_19] : memref<32x32xf32, #tpu.memory_space<vmem>>, vector<32x32xf32>
    tpu.vector_store %arg8[%c0_18, %c0_19], %34 {strides = array<i32>} : memref<32x32xf32, #tpu.memory_space<vmem>>, vector<32x32xf32>,
    %c0_20 = arith.constant 0 : index
    %c0_21 = arith.constant 0 : index
    %36 = tpu.strided_load %arg8[%c0_20, %c0_21] {strides = array<i32: 2, 1>} : memref<32x32xf32, #tpu.memory_space<vmem>>, vector<16x32xf32>
    %37 = arith.truncf %36 : vector<16x32xf32> to vector<16x32xbf16>
    %c1_22 = arith.constant 1 : index
    %c0_23 = arith.constant 0 : index
    %38 = tpu.strided_load %arg8[%c1_22, %c0_23] {strides = array<i32: 2, 1>} : memref<32x32xf32, #tpu.memory_space<vmem>>, vector<16x32xf32>
    %39 = arith.truncf %38 : vector<16x32xf32> to vector<16x32xbf16>
    %c1_24 = arith.constant 1 : index
    %c0_25 = arith.constant 0 : index
    %c0_26 = arith.constant 0 : index
    %40 = vector.load %arg3[%c1_24, %c0_25, %c0_26] : memref<2x64x32xbf16, #tpu.memory_space<vmem>>, vector<1x32x32xbf16>
    %41 = vector.shape_cast %40 : vector<1x32x32xbf16> to vector<32x32xbf16>
    %cst_27 = arith.constant dense<0.000000e+00> : vector<16x32xf32>
    %42 = tpu.matmul %37, %41, %cst_27 {dimension_numbers = #tpu.dot_dimension_numbers<[1], [0], [0], [1], [0, 0, 1, 1], [], []>} : vector<16x32xbf16>, vector<32x32xbf16>, vector<16x32xf32> -> vector<16x32xf32>
    %c1_28 = arith.constant 1 : index
    %c32 = arith.constant 32 : index
    %c0_29 = arith.constant 0 : index
    %43 = vector.load %arg3[%c1_28, %c32, %c0_29] : memref<2x64x32xbf16, #tpu.memory_space<vmem>>, vector<1x32x32xbf16>
    %44 = vector.shape_cast %43 : vector<1x32x32xbf16> to vector<32x32xbf16>
    %cst_30 = arith.constant dense<0.000000e+00> : vector<16x32xf32>
    %45 = tpu.matmul %39, %44, %cst_30 {dimension_numbers = #tpu.dot_dimension_numbers<[1], [0], [0], [1], [0, 0, 1, 1], [], []>} : vector<16x32xbf16>, vector<32x32xbf16>, vector<16x32xf32> -> vector<16x32xf32>
    %46 = arith.addf %42, %45 : vector<16x32xf32>
    %c1_31 = arith.constant 1 : index
    %c0_32 = arith.constant 0 : index
    %c0_33 = arith.constant 0 : index
    %47 = vector.load %arg4[%c1_31, %c0_32, %c0_33] : memref<2x1x32xf32, #tpu.memory_space<vmem>>, vector<1x1x32xf32>
    %48 = vector.shape_cast %47 : vector<1x1x32xf32> to vector<1x32xf32>
    %49 = vector.broadcast %48 : vector<1x32xf32> to vector<16x32xf32>
    %50 = arith.addf %46, %49 : vector<16x32xf32>
    %c0_34 = arith.constant 0 : index
    %c0_35 = arith.constant 0 : index
    %51 = vector.load %arg9[%c0_34, %c0_35] : memref<16x32xf32, #tpu.memory_space<vmem>>, vector<16x32xf32>
    tpu.vector_store %arg9[%c0_34, %c0_35], %50 {strides = array<i32>} : memref<16x32xf32, #tpu.memory_space<vmem>>, vector<16x32xf32>,
    %c0_36 = arith.constant 0 : index
    %c0_37 = arith.constant 0 : index
    %52 = tpu.strided_load %arg9[%c0_36, %c0_37] {strides = array<i32: 2, 1>} : memref<16x32xf32, #tpu.memory_space<vmem>>, vector<8x32xf32>
    %53 = arith.truncf %52 : vector<8x32xf32> to vector<8x32xbf16>
    %c1_38 = arith.constant 1 : index
    %c0_39 = arith.constant 0 : index
    %54 = tpu.strided_load %arg9[%c1_38, %c0_39] {strides = array<i32: 2, 1>} : memref<16x32xf32, #tpu.memory_space<vmem>>, vector<8x32xf32>
    %55 = arith.truncf %54 : vector<8x32xf32> to vector<8x32xbf16>
    %c0_40 = arith.constant 0 : index
    %c0_41 = arith.constant 0 : index
    %56 = vector.load %arg5[%c0_40, %c0_41] : memref<64x128xbf16, #tpu.memory_space<vmem>>, vector<32x128xbf16>
    %cst_42 = arith.constant dense<0.000000e+00> : vector<8x128xf32>
    %57 = tpu.matmul %53, %56, %cst_42 {dimension_numbers = #tpu.dot_dimension_numbers<[1], [0], [0], [1], [0, 0, 1, 1], [], []>} : vector<8x32xbf16>, vector<32x128xbf16>, vector<8x128xf32> -> vector<8x128xf32>
    %c32_43 = arith.constant 32 : index
    %c0_44 = arith.constant 0 : index
    %58 = vector.load %arg5[%c32_43, %c0_44] : memref<64x128xbf16, #tpu.memory_space<vmem>>, vector<32x128xbf16>
    %cst_45 = arith.constant dense<0.000000e+00> : vector<8x128xf32>
    %59 = tpu.matmul %55, %58, %cst_45 {dimension_numbers = #tpu.dot_dimension_numbers<[1], [0], [0], [1], [0, 0, 1, 1], [], []>} : vector<8x32xbf16>, vector<32x128xbf16>, vector<8x128xf32> -> vector<8x128xf32>
    %60 = arith.addf %57, %59 : vector<8x128xf32>
    %c0_46 = arith.constant 0 : index
    %c0_47 = arith.constant 0 : index
    %61 = vector.load %arg6[%c0_46, %c0_47] : memref<1x128xf32, #tpu.memory_space<vmem>>, vector<1x128xf32>
    %62 = vector.broadcast %61 : vector<1x128xf32> to vector<8x128xf32>
    %63 = arith.addf %60, %62 : vector<8x128xf32>
    %c0_48 = arith.constant 0 : index
    %c0_49 = arith.constant 0 : index
    %64 = vector.load %arg7[%c0_48, %c0_49] : memref<8x128xf32, #tpu.memory_space<vmem>>, vector<8x128xf32>
    tpu.vector_store %arg7[%c0_48, %c0_49], %63 {strides = array<i32>} : memref<8x128xf32, #tpu.memory_space<vmem>>, vector<8x128xf32>,
    return
  }
  func.func @transform_0(%arg0: i32) -> i32 {
    %c0_i32 = arith.constant 0 : i32
    %c0_i32_0 = arith.constant 0 : i32
    return %c0_i32 : i32
  }
  func.func @transform_1(%arg0: i32) -> (i32, i32, i32) {
    %c0_i32 = arith.constant 0 : i32
    %c0_i32_0 = arith.constant 0 : i32
    %c0_i32_1 = arith.constant 0 : i32
    return %c0_i32, %arg0, %c0_i32_0 : i32, i32, i32
  }
  func.func @transform_2(%arg0: i32) -> (i32, i32, i32) {
    %c0_i32 = arith.constant 0 : i32
    %c0_i32_0 = arith.constant 0 : i32
    %c0_i32_1 = arith.constant 0 : i32
    %c0_i32_2 = arith.constant 0 : i32
    return %c0_i32, %c0_i32_0, %c0_i32_1 : i32, i32, i32
  }
  func.func @transform_3(%arg0: i32) -> (i32, i32, i32) {
    %c0_i32 = arith.constant 0 : i32
    %c0_i32_0 = arith.constant 0 : i32
    %c0_i32_1 = arith.constant 0 : i32
    %c0_i32_2 = arith.constant 0 : i32
    return %c0_i32, %c0_i32_0, %c0_i32_1 : i32, i32, i32
  }
  func.func @transform_4(%arg0: i32) -> (i32, i32) {
    %c0_i32 = arith.constant 0 : i32
    %c0_i32_0 = arith.constant 0 : i32
    %c0_i32_1 = arith.constant 0 : i32
    return %c0_i32, %c0_i32_0 : i32, i32
  }
  func.func @transform_5(%arg0: i32) -> (i32, i32) {
    %c0_i32 = arith.constant 0 : i32
    %c0_i32_0 = arith.constant 0 : i32
    %c0_i32_1 = arith.constant 0 : i32
    return %c0_i32, %c0_i32_0 : i32, i32
  }
  func.func @transform_6(%arg0: i32) -> (i32, i32) {
    %c0_i32 = arith.constant 0 : i32
    %c0_i32_0 = arith.constant 0 : i32
    return %arg0, %c0_i32 : i32, i32
  }
}

</mosaic_0001>

<bundles_post_ra>
// kernel: tpu_custom_call.1
= control target key start
LH: loop header
LB: loop body
LE: loop exit
PB: predicated region body
PF: predicated region fallthrough
CT: control target
= control target key end

     0   :  { %11 = vsyncpa [#allocation6], 0  ;;  %s1263_s0 = inlined_call_operand.vmem [shape: f32[4], index: 0, kind: input, shape index: {}]   ;;  %s1264_s1 = inlined_call_operand.vmem [shape: bf16[4,128,64], index: 1, kind: input, shape index: {}]   ;;  %s1265_s2 = inlined_call_operand.vmem [shape: bf16[2,64,32], index: 2, kind: input, shape index: {}]   ;;  %s1266_s3 = inlined_call_operand.vmem [shape: f32[2,1,32], index: 3, kind: input, shape index: {}]   ;;  %s1267_s4 = inlined_call_operand.vmem [shape: bf16[64,128], index: 4, kind: input, shape index: {}]   ;;  %s1268_s5 = inlined_call_operand.vmem [shape: f32[1,128], index: 5, kind: input, shape index: {}]   ;;  %s1269_s6 = inlined_call_operand.hbm [shape: f32[32,128], index: 6, kind: output, shape index: {}]  }
   0x1   :  { %12 = vsyncpa [#allocation5], 0 }
   0x2   :  { %14 = vsyncpa [#allocation5 + $0x1], 0  ;;  %s1080_s21 = smov 0   ;;  %s1082_s22 = smov 0  }
   0x3   :  { %s1084_s23 = smov 0   ;;  %s1086_s24 = smov 0  }
   0x4 LB: > { %s1101_s25 = sadd.s32 4294967295, %s1042_s24   ;;  %s763_s26 = sadd.s32 4294967294, %s1042_s24   ;;  %s1042_s24 = sphi %s1086_s24, %s1277_s24   ;;  %s1038_s23 = sphi %s1084_s23, %s1276_s23   ;;  %s1034_s22 = sphi %s1082_s22, %s1275_s22   ;;  %s1030_s21 = sphi %s1080_s21, %s1274_s21  }
   0x5   : > { %s1105_s27 = sadd.s32 1, %s1042_s24   ;;  %s48_s28 = sadd.s32 1, %s1038_s23 }
   0x6   : > { %s45_s29 = ssub.s32 %s1042_s24, %s1105_s27  ;;  %p55_p0 = scmp.ne.s32.totalorder %s1038_s23, %s1034_s22 }
   0x7   : > { %p46_p1 = scmp.eq.s32.totalorder %s45_s29, 0  ;;  %p56_p2 = scmp.eq.s32.totalorder %s1042_s24, 0 }
   0x8   : > { %p169_p3 = scmp.eq.s32.totalorder %s1101_s25, 3  ;;  %p174_p4 = scmp.ne.s32.totalorder %s1034_s22, %s1030_s21 }
   0x9   : > { %s1117_s30 = scalar_select %p46_p1, %s1038_s23, %s48_s28  }
   0xa   : > { %p1119_p5 = por %p56_p2, %p55_p0  ;;  %p1123_p6 = por %p169_p3, %p55_p0 }
   0xb   : > { %p175_p7 = scmp.eq.s32.totalorder %s763_s26, 3  ;;  %p764_p8 = scmp.ge.s32.totalorder %s1042_s24, 1 }
   0xc   : > { %p182_p9 = scmp.lt.s32.totalorder %s1042_s24, 5  ;;  %p922_p11 = scmp.eq.s32.totalorder %s1101_s25, 0 }
   0xd   : > { %p1129_p10 = por %p175_p7, %p174_p4  ;;  %s194_s13 = sshll.u32 %s1263_s0, 4  ;;  %s195_s13 = int_to_ptr.vmem [resolvable:$true] %s194_s13 }
   0xe   : > { %p1134_p12 = pnand %p764_p8, %p182_p9  ;;  %s1044_s14 = smov [#allocation4]  }
   0xf   : > { %p766_p1 = scmp.ge.s32.totalorder %s1042_s24, 4 }
  0x10   : > { %p914_p13 = pneg %p1134_p12 }
  0x11   : > { %213 = sbr.rel (%p766_p1) target bundleno = 34 (0x22), region = 36 }
  0x12   : > { %p915_p0 = pnand %p922_p11, %p914_p13 }
  0x14   : > { %917 = dma.vmem_to_smem (!%p915_p0), %s195_s13, 16, %s1044_s14, [#allocation6]  }
  0x16   : > { %216 = sbr.rel (!%p1119_p5) target bundleno = 34 (0x22), region = 40  ;;  %s218_s15 = sand.u32 (%p1119_p5), 1, %s1038_s23  }
  0x17   : > { %s856_s16 = sshll.u32 (%p1119_p5), %s1042_s24, 4  ;;  %s767_s17 = sshll.u32 (%p1119_p5), %s218_s15, 6 }
  0x18   : > { %s223_s20 = scalar_lea.vmem (%p1119_p5), %s1264_s1, %s856_s16  ;;  %s220_s26 = scalar_lea.vmem (%p1119_p5), [#allocation7], %s767_s17 }
  0x19   : > { %v240_v0 = vld [vmem:[%s223_s20] sm:$0xff] (%p1119_p5)   ;;  %v244_v1 = vld [vmem:[%s223_s20 + $0x8] sm:$0xff] (%p1119_p5)  }
  0x1a   : > { %v248_v2 = vld [vmem:[%s223_s20 + $0x40] sm:$0xff] (%p1119_p5)   ;;  %241 = vst [vmem:[%s220_s26] sm:$0xff] (%p1119_p5), %v240_v0   ;;  %v252_v3 = vld [vmem:[%s223_s20 + $0x48] sm:$0xff] (%p1119_p5)  }
  0x1b   : > { %245 = vst [vmem:[%s220_s26 + $0x8] sm:$0xff] %v244_v1   ;;  %v256_v4 = vld [vmem:[%s223_s20 + $0x80] sm:$0xff]   ;;  %v260_v5 = vld [vmem:[%s223_s20 + $0x88] sm:$0xff]  }
  0x1c   : > { %249 = vst [vmem:[%s220_s26 + $0x10] sm:$0xff] %v248_v2   ;;  %v264_v6 = vld [vmem:[%s223_s20 + $0xc0] sm:$0xff]   ;;  %v268_v7 = vld [vmem:[%s223_s20 + $0xc8] sm:$0xff]  }
  0x1d   : > { %253 = vst [vmem:[%s220_s26 + $0x18] sm:$0xff] %v252_v3  }
  0x1e   : > { %257 = vst [vmem:[%s220_s26 + $0x20] sm:$0xff] %v256_v4  }
  0x1f   : > { %261 = vst [vmem:[%s220_s26 + $0x28] sm:$0xff] %v260_v5  }
  0x20   : > { %265 = vst [vmem:[%s220_s26 + $0x30] sm:$0xff] %v264_v6  }
  0x21   : > { %269 = vst [vmem:[%s220_s26 + $0x38] sm:$0xff] %v268_v7  }
  0x22 PF: > { %330 = sbr.rel (%p1134_p12) target bundleno = 518 (0x206), region = 81 }
  0x27   : > { %1021 = dma.done.wait (%p922_p11), [#allocation6], 16  }
  0x28   : > { %1023 = vsyncadd (%p922_p11), [#allocation6], 4294967280  ;;  %s1160_s28 = sand.u32 1, %s1034_s22  }
  0x29   : > { %s772_s29 = sshll.u32 %s1160_s28, 6 }
  0x2a   : > { %s1163_s7 = scalar_lea.vmem [#allocation7], %s772_s29 }
  0x2b   : > { %344 = sfence }
  0x2c   : > { %v860_v8 = vld [vmem:[%s1265_s2 + $0x18] sm:$0xff]  ;;  %s370_s10 = sld [smem:[#allocation4]]  ;;  %v870_v9 = vld [vmem:[%s1163_s7] sm:$0xff]   ;;  %v902_v10 = vld [vmem:[%s1163_s7 + $0x10] sm:$0xff]   ;;  %vm479_vm0 = vcmask 523264   ;;  %vm505_vm1 = vcmask 261120  }
  0x2d   : > { %s774_s13 = sld [smem:[#allocation4 + $0x1]]  ;;  %490 = vmatpush.bf16.msra.mxu0 %v860_v8  ;;  %v859_v11 = vld [vmem:[%s1265_s2 + $0x10] sm:$0xff]  ;;  %v871_v13 = vunpack.c.l.bf16 %v870_v9  ;;  %v872_v14 = vunpack.c.h.bf16 %v870_v9  ;;  %v906_v15 = vld [vmem:[%s1163_s7 + $0x30] sm:$0xff]   ;;  %v901_v16 = vld [vmem:[%s1163_s7 + $0x8] sm:$0xff]   ;;  %v879_v17 = vunpack.c.l.bf16 %v902_v10  ;;  %v880_v18 = vunpack.c.h.bf16 %v902_v10  ;;  %s773_s14 = sshll.u32 %s1160_s28, 3 }
  0x2e   : > { %s779_s16 = sld [smem:[#allocation4 + $0x2]]  ;;  %v904_v12 = vld [vmem:[%s1163_s7 + $0x20] sm:$0xff]   ;;  %v903_v21 = vld [vmem:[%s1163_s7 + $0x18] sm:$0xff]   ;;  %v895_v24 = vunpack.c.l.bf16 %v906_v15  ;;  %v896_v25 = vunpack.c.h.bf16 %v906_v15  ;;  %v875_v26 = vunpack.c.l.bf16 %v901_v16  ;;  %v876_v30 = vunpack.c.h.bf16 %v901_v16  ;;  %v857_v39 = vld [vmem:[%s1265_s2] sm:$0xff]  ;;  %s853_s15 = sshll.u32 %s1101_s25, 3 }
  0x2f   : > { %s784_s17 = sld [smem:[#allocation4 + $0x3]]  ;;  %v887_v19 = vunpack.c.l.bf16 %v904_v12  ;;  %v888_v20 = vunpack.c.h.bf16 %v904_v12  ;;  %v858_v22 = vld [vmem:[%s1265_s2 + $0x8] sm:$0xff]  ;;  %v883_v34 = vunpack.c.l.bf16 %v903_v21  ;;  %v884_v38 = vunpack.c.h.bf16 %v903_v21  ;;  %v905_v44 = vld [vmem:[%s1163_s7 + $0x28] sm:$0xff]   ;;  %v958_v8 = vld [vmem:[%s1266_s3] ss:$0 sm:$0xff]  ;;  %s681_s18 = scalar_lea.hbm %s1269_s6, %s853_s15 }
  0x30   : > { %v891_v49 = vunpack.c.l.bf16 %v905_v44  ;;  %v892_v50 = vunpack.c.h.bf16 %v905_v44  ;;  %v907_v55 = vld [vmem:[%s1163_s7 + $0x38] sm:$0xff]   ;;  %v864_v6 = vld [vmem:[%s1265_s2 + $0x38] sm:$0xff]  ;;  %v863_v9 = vld [vmem:[%s1265_s2 + $0x30] sm:$0xff]  ;;  %s367_s26 = scalar_lea.vmem [#allocation8], %s773_s14  ;;  %s685_s7 = sshll.u32 %s681_s18, 4  ;;  %s686_s7 = int_to_ptr.hbm [resolvable:$true] %s685_s7 }
  0x31   : > { %491 = vmatpush.bf16.msra.mxu0 %v859_v11  ;;  %v899_v57 = vunpack.c.l.bf16 %v907_v55  ;;  %v900_v58 = vunpack.c.h.bf16 %v907_v55  ;;  %v862_v7 = vld [vmem:[%s1265_s2 + $0x28] sm:$0xff]  ;;  %549 = vmatpush.bf16.msra.mxu1 %v864_v6  ;;  %v861_v10 = vld [vmem:[%s1265_s2 + $0x20] sm:$0xff]  ;;  %s683_s29 = sshll.u32 %s367_s26, 4  ;;  %s671_s25 = scalar_lea.sflag [#allocation5], %s1160_s28  ;;  %s684_s29 = int_to_ptr.vmem [resolvable:$true] %s683_s29 }
  0x32   : > { %v379_v23 = vstv %s370_s10  ;;  %578 = vmatpush.bf16.msra.mxu2 %v862_v7  ;;  %s990_s11 = sshra.s32 %s686_s7, 4  ;;  %s996_s14 = scalar_lea.hbm %s1269_s6, 32  ;;  %s991_s11 = int_to_ptr.hbm [resolvable:$true] %s990_s11 }
  0x33   : > { %v380_v27 = vmul.f32 %v871_v13, %v379_v23  ;;  %v381_v28 = vmul.f32 %v872_v14, %v379_v23  ;;  %v394_v29 = vstv %s774_s13  ;;  %v382_v47 = vmul.f32 %v875_v26, %v379_v23  ;;  %v868_v26 = vld [vmem:[%s1267_s4 + $0x18] sm:$0xff]  ;;  %s992_s12 = scalar_lea.hbm %s991_s11, 8  ;;  %p997_p5 = scmp.lt.s32.totalorder %s991_s11, %s1269_s6 }
  0x34   : > { %v395_v31 = vmul.f32 %v879_v17, %v394_v29  ;;  %v396_v32 = vmul.f32 %v880_v18, %v394_v29  ;;  %v413_v33 = vstv %s779_s16  ;;  %v383_v48 = vmul.f32 %v876_v30, %v379_v23  ;;  %629 = vmatpush.bf16.msra.mxu3 %v868_v26  ;;  %v959_v30 = vld [vmem:[%s1266_s3 + $0x1] ss:$0 sm:$0xff]  ;;  %p993_p2 = scmp.ne.s32.totalorder %s991_s11, %s992_s12  ;;  %p998_p7 = scmp.lt.s32.totalorder %s996_s14, %s992_s12 }
  0x35   : > { %v414_v35 = vmul.f32 %v887_v19, %v413_v33  ;;  %v415_v36 = vmul.f32 %v888_v20, %v413_v33  ;;  %v432_v37 = vstv %s784_s17  ;;  %492 = vmatpush.bf16.msra.mxu0 %v858_v22  ;;  %v397_v53 = vmul.f32 %v883_v34, %v394_v29  ;;  %550 = vmatpush.bf16.msra.mxu1 %v863_v9 }
  0x36   : > { %v399_v40 = vadd.f32 %v395_v31, %v380_v27  ;;  %v400_v41 = vadd.f32 %v396_v32, %v381_v28  ;;  %v433_v42 = vmul.f32 %v895_v24, %v432_v37  ;;  %v434_v43 = vmul.f32 %v896_v25, %v432_v37  ;;  %579 = vmatpush.bf16.msra.mxu2 %v861_v10  ;;  %v866_v25 = vld [vmem:[%s1267_s4 + $0x8] sm:$0xff]  ;;  %v867_v27 = vld [vmem:[%s1267_s4 + $0x10] sm:$0xff]  ;;  %v865_v28 = vld [vmem:[%s1267_s4] sm:$0xff]  ;;  %p994_p3 = pnand %p993_p2, %p1123_p6  ;;  %p999_p8 = por %p998_p7, %p997_p5 }
  0x37   : > { %v398_v54 = vmul.f32 %v884_v38, %v394_v29  ;;  %v401_v59 = vadd.f32 %v397_v53, %v382_v47  ;;  %v416_v61 = vmul.f32 %v891_v49, %v413_v33  ;;  %v417_v62 = vmul.f32 %v892_v50, %v413_v33 }
  0x38   : > { %v418_v45 = vadd.f32 %v414_v35, %v399_v40  ;;  %v419_v46 = vadd.f32 %v415_v36, %v400_v41  ;;  %v435_v1 = vmul.f32 %v899_v57, %v432_v37  ;;  %v436_v2 = vmul.f32 %v900_v58, %v432_v37  ;;  %630 = vmatpush.bf16.msra.mxu3 %v867_v27  ;;  %p995_p4 = pneg %p994_p3 }
  0x39   : > { %493 = vmatpush.bf16.msra.mxu0 %v857_v39  ;;  %v402_v60 = vadd.f32 %v398_v54, %v383_v48  ;;  %v420_v63 = vadd.f32 %v416_v61, %v401_v59  ;;  %657 = vmatpush.bf16.msrb.mxu1 %v866_v25 }
  0x3a   : > { %v437_v51 = vadd.f32 %v433_v42, %v418_v45  ;;  %v438_v52 = vadd.f32 %v434_v43, %v419_v46  ;;  %v960_v43 = vld [vmem:[%s1268_s5] ss:$0 sm:$0xff]  ;;  %p1000_p9 = pnand %p999_p8, %p995_p4 }
  0x3b   : > { %v421_v0 = vadd.f32 %v417_v62, %v402_v60  ;;  %v439_v3 = vadd.f32 %v435_v1, %v420_v63 }
  0x3c   : > { %v441_v56 = vpack.c.bf16 %v438_v52, %v437_v51 }
  0x3d   : > { %v440_v4 = vadd.f32 %v436_v2, %v421_v0  ;;  %658 = vmatpush.bf16.msrb.mxu1 %v865_v28 }
  0x3e   : > { %805 = vmatmul.msk.bf16.vlgmr.msra.gmra.mxu0 %vm479_vm0, %v441_v56 }
  0x3f   : > { %v442_v5 = vpack.c.bf16 %v440_v4, %v439_v3 }
  0x4e   : > { %806 = vmatmul.msk.bf16.gmra.mxu0 %vm479_vm0, %v442_v5 }
  0xbb   : > { %v495_v11 = vpop.f32.mrf.mxu0 }
  0xbc   : > { %v496_v12 = vadd.f32 %v958_v8, %v495_v11 }
  0xbe   : > { %506 = vst.msk [vmem:[#allocation2] sm:$0xff] %vm505_vm1, %v496_v12 }
  0xc3   : > { %v497_v13 = vpop.f32.mrf.mxu0 }
  0xc4   : > { %v498_v14 = vadd.f32 %v958_v8, %v497_v13 }
  0xc6   : > { %507 = vst.msk [vmem:[#allocation2 + $0x8] sm:$0xff] %vm505_vm1, %v498_v14 }
  0xcb   : > { %v500_v15 = vpop.f32.mrf.mxu0 }
  0xcc   : > { %v501_v16 = vadd.f32 %v958_v8, %v500_v15 }
  0xcd   : > { %v515_v19 = vld [vmem:[#allocation2 + $0x1] ss:$2 sm:$0xff]  ;;  %v510_v21 = vld [vmem:[#allocation2] ss:$2 sm:$0xff] }
  0xce   : > { %508 = vst.msk [vmem:[#allocation2 + $0x10] sm:$0xff] %vm505_vm1, %v501_v16 }
  0xd3   : > { %v502_v17 = vpop.f32.mrf.mxu0 }
  0xd4   : > { %v503_v18 = vadd.f32 %v958_v8, %v502_v17 }
  0xd6   : > { %509 = vst.msk [vmem:[#allocation2 + $0x18] sm:$0xff] %vm505_vm1, %v503_v18 }
  0xdd   : > { %v517_v20 = vld [vmem:[#allocation2 + $0x11] ss:$2 sm:$0xff]  ;;  %v512_v22 = vld [vmem:[#allocation2 + $0x10] ss:$2 sm:$0xff] }
  0xde   : > { %v518_v23 = vpack.c.bf16 %v517_v20, %v515_v19  ;;  %v513_v24 = vpack.c.bf16 %v512_v22, %v510_v21 }
  0xe0   : > { %823 = vmatmul.msk.bf16.vlgmr.msra.gmra.mxu1 %vm505_vm1, %v518_v23  ;;  %832 = vmatmul.msk.bf16.vlgmr.msra.gmra.mxu2 %vm505_vm1, %v513_v24 }
 0x15d   : > { %v552_v29 = vpop.f32.mrf.mxu1 }
 0x163   : > { %v581_v31 = vpop.f32.mrf.mxu2 }
 0x164   : > { %v582_v32 = vadd.f32 %v581_v31, %v552_v29 }
 0x165   : > { %v554_v34 = vpop.f32.mrf.mxu1 }
 0x166   : > { %v591_v33 = vadd.f32 %v959_v30, %v582_v32 }
 0x168   : > { %593 = vst.msk [vmem:[#allocation3] sm:$0xff] %vm505_vm1, %v591_v33 }
 0x16b   : > { %v583_v35 = vpop.f32.mrf.mxu2 }
 0x16c   : > { %v584_v36 = vadd.f32 %v583_v35, %v554_v34 }
 0x16e   : > { %v592_v37 = vadd.f32 %v959_v30, %v584_v36 }
 0x170   : > { %594 = vst.msk [vmem:[#allocation3 + $0x8] sm:$0xff] %vm505_vm1, %v592_v37 }
 0x177   : > { %v598_v38 = vld [vmem:[#allocation3 + $0x1] ss:$2 sm:$0xff]  ;;  %v595_v39 = vld [vmem:[#allocation3] ss:$2 sm:$0xff] }
 0x178   : > { %v599_v40 = vpack.c.bf16 %v598_v38, %v598_v38  ;;  %v596_v41 = vpack.c.bf16 %v595_v39, %v595_v39 }
 0x17a   : > { %842 = vmatmul.msk.bf16.vlgmr.msra.gmra.mxu3 %vm505_vm1, %v599_v40  ;;  %851 = vmatmul.msk.bf16.vlgmr.msrb.gmra.mxu1 %vm505_vm1, %v596_v41 }
 0x1f7   : > { %v660_v42 = vpop.f32.mrf.mxu1 }
 0x1fd   : > { %v632_v44 = vpop.f32.mrf.mxu3 }
 0x1fe   : > { %v661_v45 = vadd.f32 %v660_v42, %v632_v44 }
 0x1ff   : > { %v662_v46 = vpop.f32.mrf.mxu1 }
 0x200   : > { %v668_v47 = vadd.f32 %v960_v43, %v661_v45 }
 0x202   : > { %669 = vst [vmem:[%s367_s26] sm:$0xff] %v668_v47 }
 0x203   : > { %1003 = shalt.err (!%p1000_p9)
}
 0x204   : > { %912 = dma.vmem_to_hbm [thread:$0]  (%p1123_p6), %s684_s29, 128, %s686_s7, %s671_s25  }
 0x205   : > { %v634_v48 = vpop.f32.mrf.mxu3 }
 0x206 PF: > { %p924_p11 = scmp.ge.s32.totalorder %s1042_s24, 2  ;;  %s697_s28 = sand.u32 1, %s1030_s21  }
 0x207   : > { %s698_s17 = scalar_lea.sflag [#allocation5], %s697_s28 }
 0x208   : > { %p919_p12 = pnand %p924_p11, %p1129_p10 }
 0x20a   : > { %p920_p13 = pneg %p919_p12 }
 0x20c   : > { %1025 = dma.done.wait (%p920_p13), %s698_s17, 128  }
 0x20d   : > { %1027 = vsyncadd (%p920_p13), %s698_s17, 4294967168  ;;  %p17_p0 = scmp.ge.s32.totalorder %s1105_s27, 6   ;;  %s1274_s21 = smov %s1034_s22 }
 0x20e   : > { %s1275_s22 = smov %s1038_s23  ;;  %s1276_s23 = smov %s1117_s30 }
 0x20f   : > { %s1277_s24 = smov %s1105_s27  ;;  %19 = sbr.rel (!%p17_p0) target bundleno = 4 (0x4), region = 139 }
 0x214   :  { %704 = vsyncpa [#allocation5], 1 }
 0x215   :  { %706 = vsyncpa [#allocation5 + $0x1], 1 }
 0x216   :  { %707 = vsyncpa [#allocation6], 1 }
 0x217   :  { %709 = vsyncpa [#allocation6 + $0x1], 1 }

// kernel: tpu_custom_call.1
= control target key start
LH: loop header
LB: loop body
LE: loop exit
PB: predicated region body
PF: predicated region fallthrough
CT: control target
= control target key end

     0   :  { %11 = vsyncpa [#allocation6], 0  ;;  %s1263_s0 = inlined_call_operand.vmem [shape: f32[4], index: 0, kind: input, shape index: {}]   ;;  %s1264_s1 = inlined_call_operand.vmem [shape: bf16[4,128,64], index: 1, kind: input, shape index: {}]   ;;  %s1265_s2 = inlined_call_operand.vmem [shape: bf16[2,64,32], index: 2, kind: input, shape index: {}]   ;;  %s1266_s3 = inlined_call_operand.vmem [shape: f32[2,1,32], index: 3, kind: input, shape index: {}]   ;;  %s1267_s4 = inlined_call_operand.vmem [shape: bf16[64,128], index: 4, kind: input, shape index: {}]   ;;  %s1268_s5 = inlined_call_operand.vmem [shape: f32[1,128], index: 5, kind: input, shape index: {}]   ;;  %s1269_s6 = inlined_call_operand.hbm [shape: f32[32,128], index: 6, kind: output, shape index: {}]  }
   0x1   :  { %12 = vsyncpa [#allocation5], 0 }
   0x2   :  { %14 = vsyncpa [#allocation5 + $0x1], 0  ;;  %s1080_s21 = smov 0   ;;  %s1082_s22 = smov 0  }
   0x3   :  { %s1084_s23 = smov 0   ;;  %s1086_s24 = smov 0  }
   0x4 LB: > { %s1101_s25 = sadd.s32 4294967295, %s1042_s24   ;;  %s763_s26 = sadd.s32 4294967294, %s1042_s24   ;;  %s1042_s24 = sphi %s1086_s24, %s1277_s24   ;;  %s1038_s23 = sphi %s1084_s23, %s1276_s23   ;;  %s1034_s22 = sphi %s1082_s22, %s1275_s22   ;;  %s1030_s21 = sphi %s1080_s21, %s1274_s21  }
   0x5   : > { %s1105_s27 = sadd.s32 1, %s1042_s24   ;;  %s48_s28 = sadd.s32 1, %s1038_s23 }
   0x6   : > { %s45_s29 = ssub.s32 %s1042_s24, %s1105_s27  ;;  %p55_p0 = scmp.ne.s32.totalorder %s1038_s23, %s1034_s22 }
   0x7   : > { %p46_p1 = scmp.eq.s32.totalorder %s45_s29, 0  ;;  %p56_p2 = scmp.eq.s32.totalorder %s1042_s24, 0 }
   0x8   : > { %p169_p3 = scmp.eq.s32.totalorder %s1101_s25, 3  ;;  %p174_p4 = scmp.ne.s32.totalorder %s1034_s22, %s1030_s21 }
   0x9   : > { %s1117_s30 = scalar_select %p46_p1, %s1038_s23, %s48_s28  }
   0xa   : > { %p1119_p5 = por %p56_p2, %p55_p0  ;;  %p1123_p6 = por %p169_p3, %p55_p0 }
   0xb   : > { %p175_p7 = scmp.eq.s32.totalorder %s763_s26, 3  ;;  %p764_p8 = scmp.ge.s32.totalorder %s1042_s24, 1 }
   0xc   : > { %p182_p9 = scmp.lt.s32.totalorder %s1042_s24, 5  ;;  %p922_p11 = scmp.eq.s32.totalorder %s1101_s25, 0 }
   0xd   : > { %p1129_p10 = por %p175_p7, %p174_p4  ;;  %s194_s13 = sshll.u32 %s1263_s0, 4  ;;  %s195_s13 = int_to_ptr.vmem [resolvable:$true] %s194_s13 }
   0xe   : > { %p1134_p12 = pnand %p764_p8, %p182_p9  ;;  %s1044_s14 = smov [#allocation4]  }
   0xf   : > { %p766_p1 = scmp.ge.s32.totalorder %s1042_s24, 4 }
  0x10   : > { %p914_p13 = pneg %p1134_p12 }
  0x11   : > { %213 = sbr.rel (%p766_p1) target bundleno = 34 (0x22), region = 36 }
  0x12   : > { %p915_p0 = pnand %p922_p11, %p914_p13 }
  0x14   : > { %917 = dma.vmem_to_smem (!%p915_p0), %s195_s13, 16, %s1044_s14, [#allocation6]  }
  0x16   : > { %216 = sbr.rel (!%p1119_p5) target bundleno = 34 (0x22), region = 40  ;;  %s218_s15 = sand.u32 (%p1119_p5), 1, %s1038_s23  }
  0x17   : > { %s856_s16 = sshll.u32 (%p1119_p5), %s1042_s24, 4  ;;  %s767_s17 = sshll.u32 (%p1119_p5), %s218_s15, 6 }
  0x18   : > { %s223_s20 = scalar_lea.vmem (%p1119_p5), %s1264_s1, %s856_s16  ;;  %s220_s26 = scalar_lea.vmem (%p1119_p5), [#allocation7], %s767_s17 }
  0x19   : > { %v240_v0 = vld [vmem:[%s223_s20] sm:$0xff] (%p1119_p5)   ;;  %v244_v1 = vld [vmem:[%s223_s20 + $0x8] sm:$0xff] (%p1119_p5)  }
  0x1a   : > { %v248_v2 = vld [vmem:[%s223_s20 + $0x40] sm:$0xff] (%p1119_p5)   ;;  %241 = vst [vmem:[%s220_s26] sm:$0xff] (%p1119_p5), %v240_v0   ;;  %v252_v3 = vld [vmem:[%s223_s20 + $0x48] sm:$0xff] (%p1119_p5)  }
  0x1b   : > { %245 = vst [vmem:[%s220_s26 + $0x8] sm:$0xff] %v244_v1   ;;  %v256_v4 = vld [vmem:[%s223_s20 + $0x80] sm:$0xff]   ;;  %v260_v5 = vld [vmem:[%s223_s20 + $0x88] sm:$0xff]  }
  0x1c   : > { %249 = vst [vmem:[%s220_s26 + $0x10] sm:$0xff] %v248_v2   ;;  %v264_v6 = vld [vmem:[%s223_s20 + $0xc0] sm:$0xff]   ;;  %v268_v7 = vld [vmem:[%s223_s20 + $0xc8] sm:$0xff]  }
  0x1d   : > { %253 = vst [vmem:[%s220_s26 + $0x18] sm:$0xff] %v252_v3  }
  0x1e   : > { %257 = vst [vmem:[%s220_s26 + $0x20] sm:$0xff] %v256_v4  }
  0x1f   : > { %261 = vst [vmem:[%s220_s26 + $0x28] sm:$0xff] %v260_v5  }
  0x20   : > { %265 = vst [vmem:[%s220_s26 + $0x30] sm:$0xff] %v264_v6  }
  0x21   : > { %269 = vst [vmem:[%s220_s26 + $0x38] sm:$0xff] %v268_v7  }
  0x22 PF: > { %330 = sbr.rel (%p1134_p12) target bundleno = 518 (0x206), region = 81 }
  0x27   : > { %1021 = dma.done.wait (%p922_p11), [#allocation6], 16  }
  0x28   : > { %1023 = vsyncadd (%p922_p11), [#allocation6], 4294967280  ;;  %s1160_s28 = sand.u32 1, %s1034_s22  }
  0x29   : > { %s772_s29 = sshll.u32 %s1160_s28, 6 }
  0x2a   : > { %s1163_s7 = scalar_lea.vmem [#allocation7], %s772_s29 }
  0x2b   : > { %344 = sfence }
  0x2c   : > { %v860_v8 = vld [vmem:[%s1265_s2 + $0x18] sm:$0xff]  ;;  %s370_s10 = sld [smem:[#allocation4]]  ;;  %v870_v9 = vld [vmem:[%s1163_s7] sm:$0xff]   ;;  %v902_v10 = vld [vmem:[%s1163_s7 + $0x10] sm:$0xff]   ;;  %vm479_vm0 = vcmask 523264   ;;  %vm505_vm1 = vcmask 261120  }
  0x2d   : > { %s774_s13 = sld [smem:[#allocation4 + $0x1]]  ;;  %490 = vmatpush.bf16.msra.mxu0 %v860_v8  ;;  %v859_v11 = vld [vmem:[%s1265_s2 + $0x10] sm:$0xff]  ;;  %v871_v13 = vunpack.c.l.bf16 %v870_v9  ;;  %v872_v14 = vunpack.c.h.bf16 %v870_v9  ;;  %v906_v15 = vld [vmem:[%s1163_s7 + $0x30] sm:$0xff]   ;;  %v901_v16 = vld [vmem:[%s1163_s7 + $0x8] sm:$0xff]   ;;  %v879_v17 = vunpack.c.l.bf16 %v902_v10  ;;  %v880_v18 = vunpack.c.h.bf16 %v902_v10  ;;  %s773_s14 = sshll.u32 %s1160_s28, 3 }
  0x2e   : > { %s779_s16 = sld [smem:[#allocation4 + $0x2]]  ;;  %v904_v12 = vld [vmem:[%s1163_s7 + $0x20] sm:$0xff]   ;;  %v903_v21 = vld [vmem:[%s1163_s7 + $0x18] sm:$0xff]   ;;  %v895_v24 = vunpack.c.l.bf16 %v906_v15  ;;  %v896_v25 = vunpack.c.h.bf16 %v906_v15  ;;  %v875_v26 = vunpack.c.l.bf16 %v901_v16  ;;  %v876_v30 = vunpack.c.h.bf16 %v901_v16  ;;  %v857_v39 = vld [vmem:[%s1265_s2] sm:$0xff]  ;;  %s853_s15 = sshll.u32 %s1101_s25, 3 }
  0x2f   : > { %s784_s17 = sld [smem:[#allocation4 + $0x3]]  ;;  %v887_v19 = vunpack.c.l.bf16 %v904_v12  ;;  %v888_v20 = vunpack.c.h.bf16 %v904_v12  ;;  %v858_v22 = vld [vmem:[%s1265_s2 + $0x8] sm:$0xff]  ;;  %v883_v34 = vunpack.c.l.bf16 %v903_v21  ;;  %v884_v38 = vunpack.c.h.bf16 %v903_v21  ;;  %v905_v44 = vld [vmem:[%s1163_s7 + $0x28] sm:$0xff]   ;;  %v958_v8 = vld [vmem:[%s1266_s3] ss:$0 sm:$0xff]  ;;  %s681_s18 = scalar_lea.hbm %s1269_s6, %s853_s15 }
  0x30   : > { %v891_v49 = vunpack.c.l.bf16 %v905_v44  ;;  %v892_v50 = vunpack.c.h.bf16 %v905_v44  ;;  %v907_v55 = vld [vmem:[%s1163_s7 + $0x38] sm:$0xff]   ;;  %v864_v6 = vld [vmem:[%s1265_s2 + $0x38] sm:$0xff]  ;;  %v863_v9 = vld [vmem:[%s1265_s2 + $0x30] sm:$0xff]  ;;  %s367_s26 = scalar_lea.vmem [#allocation8], %s773_s14  ;;  %s685_s7 = sshll.u32 %s681_s18, 4  ;;  %s686_s7 = int_to_ptr.hbm [resolvable:$true] %s685_s7 }
  0x31   : > { %491 = vmatpush.bf16.msra.mxu0 %v859_v11  ;;  %v899_v57 = vunpack.c.l.bf16 %v907_v55  ;;  %v900_v58 = vunpack.c.h.bf16 %v907_v55  ;;  %v862_v7 = vld [vmem:[%s1265_s2 + $0x28] sm:$0xff]  ;;  %549 = vmatpush.bf16.msra.mxu1 %v864_v6  ;;  %v861_v10 = vld [vmem:[%s1265_s2 + $0x20] sm:$0xff]  ;;  %s683_s29 = sshll.u32 %s367_s26, 4  ;;  %s671_s25 = scalar_lea.sflag [#allocation5], %s1160_s28  ;;  %s684_s29 = int_to_ptr.vmem [resolvable:$true] %s683_s29 }
  0x32   : > { %v379_v23 = vstv %s370_s10  ;;  %578 = vmatpush.bf16.msra.mxu2 %v862_v7  ;;  %s990_s11 = sshra.s32 %s686_s7, 4  ;;  %s996_s14 = scalar_lea.hbm %s1269_s6, 32  ;;  %s991_s11 = int_to_ptr.hbm [resolvable:$true] %s990_s11 }
  0x33   : > { %v380_v27 = vmul.f32 %v871_v13, %v379_v23  ;;  %v381_v28 = vmul.f32 %v872_v14, %v379_v23  ;;  %v394_v29 = vstv %s774_s13  ;;  %v382_v47 = vmul.f32 %v875_v26, %v379_v23  ;;  %v868_v26 = vld [vmem:[%s1267_s4 + $0x18] sm:$0xff]  ;;  %s992_s12 = scalar_lea.hbm %s991_s11, 8  ;;  %p997_p5 = scmp.lt.s32.totalorder %s991_s11, %s1269_s6 }
  0x34   : > { %v395_v31 = vmul.f32 %v879_v17, %v394_v29  ;;  %v396_v32 = vmul.f32 %v880_v18, %v394_v29  ;;  %v413_v33 = vstv %s779_s16  ;;  %v383_v48 = vmul.f32 %v876_v30, %v379_v23  ;;  %629 = vmatpush.bf16.msra.mxu3 %v868_v26  ;;  %v959_v30 = vld [vmem:[%s1266_s3 + $0x1] ss:$0 sm:$0xff]  ;;  %p993_p2 = scmp.ne.s32.totalorder %s991_s11, %s992_s12  ;;  %p998_p7 = scmp.lt.s32.totalorder %s996_s14, %s992_s12 }
  0x35   : > { %v414_v35 = vmul.f32 %v887_v19, %v413_v33  ;;  %v415_v36 = vmul.f32 %v888_v20, %v413_v33  ;;  %v432_v37 = vstv %s784_s17  ;;  %492 = vmatpush.bf16.msra.mxu0 %v858_v22  ;;  %v397_v53 = vmul.f32 %v883_v34, %v394_v29  ;;  %550 = vmatpush.bf16.msra.mxu1 %v863_v9 }
  0x36   : > { %v399_v40 = vadd.f32 %v395_v31, %v380_v27  ;;  %v400_v41 = vadd.f32 %v396_v32, %v381_v28  ;;  %v433_v42 = vmul.f32 %v895_v24, %v432_v37  ;;  %v434_v43 = vmul.f32 %v896_v25, %v432_v37  ;;  %579 = vmatpush.bf16.msra.mxu2 %v861_v10  ;;  %v866_v25 = vld [vmem:[%s1267_s4 + $0x8] sm:$0xff]  ;;  %v867_v27 = vld [vmem:[%s1267_s4 + $0x10] sm:$0xff]  ;;  %v865_v28 = vld [vmem:[%s1267_s4] sm:$0xff]  ;;  %p994_p3 = pnand %p993_p2, %p1123_p6  ;;  %p999_p8 = por %p998_p7, %p997_p5 }
  0x37   : > { %v398_v54 = vmul.f32 %v884_v38, %v394_v29  ;;  %v401_v59 = vadd.f32 %v397_v53, %v382_v47  ;;  %v416_v61 = vmul.f32 %v891_v49, %v413_v33  ;;  %v417_v62 = vmul.f32 %v892_v50, %v413_v33 }
  0x38   : > { %v418_v45 = vadd.f32 %v414_v35, %v399_v40  ;;  %v419_v46 = vadd.f32 %v415_v36, %v400_v41  ;;  %v435_v1 = vmul.f32 %v899_v57, %v432_v37  ;;  %v436_v2 = vmul.f32 %v900_v58, %v432_v37  ;;  %630 = vmatpush.bf16.msra.mxu3 %v867_v27  ;;  %p995_p4 = pneg %p994_p3 }
  0x39   : > { %493 = vmatpush.bf16.msra.mxu0 %v857_v39  ;;  %v402_v60 = vadd.f32 %v398_v54, %v383_v48  ;;  %v420_v63 = vadd.f32 %v416_v61, %v401_v59  ;;  %657 = vmatpush.bf16.msrb.mxu1 %v866_v25 }
  0x3a   : > { %v437_v51 = vadd.f32 %v433_v42, %v418_v45  ;;  %v438_v52 = vadd.f32 %v434_v43, %v419_v46  ;;  %v960_v43 = vld [vmem:[%s1268_s5] ss:$0 sm:$0xff]  ;;  %p1000_p9 = pnand %p999_p8, %p995_p4 }
  0x3b   : > { %v421_v0 = vadd.f32 %v417_v62, %v402_v60  ;;  %v439_v3 = vadd.f32 %v435_v1, %v420_v63 }
  0x3c   : > { %v441_v56 = vpack.c.bf16 %v438_v52, %v437_v51 }
  0x3d   : > { %v440_v4 = vadd.f32 %v436_v2, %v421_v0  ;;  %658 = vmatpush.bf16.msrb.mxu1 %v865_v28 }
  0x3e   : > { %805 = vmatmul.msk.bf16.vlgmr.msra.gmra.mxu0 %vm479_vm0, %v441_v56 }
  0x3f   : > { %v442_v5 = vpack.c.bf16 %v440_v4, %v439_v3 }
  0x4e   : > { %806 = vmatmul.msk.bf16.gmra.mxu0 %vm479_vm0, %v442_v5 }
  0xbb   : > { %v495_v11 = vpop.f32.mrf.mxu0 }
  0xbc   : > { %v496_v12 = vadd.f32 %v958_v8, %v495_v11 }
  0xbe   : > { %506 = vst.msk [vmem:[#allocation2] sm:$0xff] %vm505_vm1, %v496_v12 }
  0xc3   : > { %v497_v13 = vpop.f32.mrf.mxu0 }
  0xc4   : > { %v498_v14 = vadd.f32 %v958_v8, %v497_v13 }
  0xc6   : > { %507 = vst.msk [vmem:[#allocation2 + $0x8] sm:$0xff] %vm505_vm1, %v498_v14 }
  0xcb   : > { %v500_v15 = vpop.f32.mrf.mxu0 }
  0xcc   : > { %v501_v16 = vadd.f32 %v958_v8, %v500_v15 }
  0xcd   : > { %v515_v19 = vld [vmem:[#allocation2 + $0x1] ss:$2 sm:$0xff]  ;;  %v510_v21 = vld [vmem:[#allocation2] ss:$2 sm:$0xff] }
  0xce   : > { %508 = vst.msk [vmem:[#allocation2 + $0x10] sm:$0xff] %vm505_vm1, %v501_v16 }
  0xd3   : > { %v502_v17 = vpop.f32.mrf.mxu0 }
  0xd4   : > { %v503_v18 = vadd.f32 %v958_v8, %v502_v17 }
  0xd6   : > { %509 = vst.msk [vmem:[#allocation2 + $0x18] sm:$0xff] %vm505_vm1, %v503_v18 }
  0xdd   : > { %v517_v20 = vld [vmem:[#allocation2 + $0x11] ss:$2 sm:$0xff]  ;;  %v512_v22 = vld [vmem:[#allocation2 + $0x10] ss:$2 sm:$0xff] }
  0xde   : > { %v518_v23 = vpack.c.bf16 %v517_v20, %v515_v19  ;;  %v513_v24 = vpack.c.bf16 %v512_v22, %v510_v21 }
  0xe0   : > { %823 = vmatmul.msk.bf16.vlgmr.msra.gmra.mxu1 %vm505_vm1, %v518_v23  ;;  %832 = vmatmul.msk.bf16.vlgmr.msra.gmra.mxu2 %vm505_vm1, %v513_v24 }
 0x15d   : > { %v552_v29 = vpop.f32.mrf.mxu1 }
 0x163   : > { %v581_v31 = vpop.f32.mrf.mxu2 }
 0x164   : > { %v582_v32 = vadd.f32 %v581_v31, %v552_v29 }
 0x165   : > { %v554_v34 = vpop.f32.mrf.mxu1 }
 0x166   : > { %v591_v33 = vadd.f32 %v959_v30, %v582_v32 }
 0x168   : > { %593 = vst.msk [vmem:[#allocation3] sm:$0xff] %vm505_vm1, %v591_v33 }
 0x16b   : > { %v583_v35 = vpop.f32.mrf.mxu2 }
 0x16c   : > { %v584_v36 = vadd.f32 %v583_v35, %v554_v34 }
 0x16e   : > { %v592_v37 = vadd.f32 %v959_v30, %v584_v36 }
 0x170   : > { %594 = vst.msk [vmem:[#allocation3 + $0x8] sm:$0xff] %vm505_vm1, %v592_v37 }
 0x177   : > { %v598_v38 = vld [vmem:[#allocation3 + $0x1] ss:$2 sm:$0xff]  ;;  %v595_v39 = vld [vmem:[#allocation3] ss:$2 sm:$0xff] }
 0x178   : > { %v599_v40 = vpack.c.bf16 %v598_v38, %v598_v38  ;;  %v596_v41 = vpack.c.bf16 %v595_v39, %v595_v39 }
 0x17a   : > { %842 = vmatmul.msk.bf16.vlgmr.msra.gmra.mxu3 %vm505_vm1, %v599_v40  ;;  %851 = vmatmul.msk.bf16.vlgmr.msrb.gmra.mxu1 %vm505_vm1, %v596_v41 }
 0x1f7   : > { %v660_v42 = vpop.f32.mrf.mxu1 }
 0x1fd   : > { %v632_v44 = vpop.f32.mrf.mxu3 }
 0x1fe   : > { %v661_v45 = vadd.f32 %v660_v42, %v632_v44 }
 0x1ff   : > { %v662_v46 = vpop.f32.mrf.mxu1 }
 0x200   : > { %v668_v47 = vadd.f32 %v960_v43, %v661_v45 }
 0x202   : > { %669 = vst [vmem:[%s367_s26] sm:$0xff] %v668_v47 }
 0x203   : > { %1003 = shalt.err (!%p1000_p9)
}
 0x204   : > { %912 = dma.vmem_to_hbm [thread:$0]  (%p1123_p6), %s684_s29, 128, %s686_s7, %s671_s25  }
 0x205   : > { %v634_v48 = vpop.f32.mrf.mxu3 }
 0x206 PF: > { %p924_p11 = scmp.ge.s32.totalorder %s1042_s24, 2  ;;  %s697_s28 = sand.u32 1, %s1030_s21  }
 0x207   : > { %s698_s17 = scalar_lea.sflag [#allocation5], %s697_s28 }
 0x208   : > { %p919_p12 = pnand %p924_p11, %p1129_p10 }
 0x20a   : > { %p920_p13 = pneg %p919_p12 }
 0x20c   : > { %1025 = dma.done.wait (%p920_p13), %s698_s17, 128  }
 0x20d   : > { %1027 = vsyncadd (%p920_p13), %s698_s17, 4294967168  ;;  %p17_p0 = scmp.ge.s32.totalorder %s1105_s27, 6   ;;  %s1274_s21 = smov %s1034_s22 }
 0x20e   : > { %s1275_s22 = smov %s1038_s23  ;;  %s1276_s23 = smov %s1117_s30 }
 0x20f   : > { %s1277_s24 = smov %s1105_s27  ;;  %19 = sbr.rel (!%p17_p0) target bundleno = 4 (0x4), region = 139 }
 0x214   :  { %704 = vsyncpa [#allocation5], 1 }
 0x215   :  { %706 = vsyncpa [#allocation5 + $0x1], 1 }
 0x216   :  { %707 = vsyncpa [#allocation6], 1 }
 0x217   :  { %709 = vsyncpa [#allocation6 + $0x1], 1 }

</bundles_post_ra>
